<compile_context>
chip_gen: v6e
topology: v6e:2x2x1
jax: 0.10.0
libtpu: 0.0.40
codegen_flags: <defaults>
</compile_context>

<pallas_src>
import numpy as np

import jax
import jax.numpy as jnp
from jax.experimental import pallas as pl
from jax.experimental.pallas import tpu as pltpu

MAX_LV = 3       # message-passing levels (module default)
LANE = 128       # TPU lane width: latent/output dims padded to this
ROW_TILE = 1024  # default node-row/col tile (amortizes ~0.35us/step overhead)


def _round_up(x, m):
    return ((x + m - 1) // m) * m


def _pick_tile(n, target=ROW_TILE):
    """Choose node tile T and padded N (N_pad % T == 0, T % 128 == 0)."""
    if n >= target:
        return target, _round_up(n, target)
    t = _round_up(max(n, 8), LANE)
    return t, t


def _vmem_limit_cap():
    # Generation-aware scoped-VMEM ceiling: ~75% of physical VMEM
    # (v5e/v6e: 128 MiB -> 96 MiB, v7x: 64 MiB -> 48 MiB). Conservative
    # fallback if the query is unavailable.
    try:
        cap = int(pltpu.get_tpu_info().vmem_capacity_bytes)
    except Exception:
        cap = 64 << 20
    return max(int(0.75 * cap), 32 << 20)


def _compiler_params(semantics, vmem_bytes):
    return pltpu.CompilerParams(
        dimension_semantics=semantics,
        vmem_limit_bytes=int(min(max(vmem_bytes, 16 << 20), _vmem_limit_cap())),
    )


# --------------------------- kernels ----------------------------------------


def _input_kernel(nf_ref, wn_ref, bn_ref, msg_ref, cur_ref):
    # input_message = w_n2l(node_feat); input_potential = relu(input_message)
    msg = (
        jnp.dot(nf_ref[...], wn_ref[...], preferred_element_type=jnp.float32)
        + bn_ref[...]
    )
    msg_ref[...] = msg
    cur_ref[...] = jnp.maximum(msg, 0.0)


def _make_level_kernel(use_bf16_mxu):
    """One mean-field level: new = relu(conv_params(n2n @ cur) + input_message).

    Grid is (row_tile, k_slot); k_slot walks the scalar-prefetched list of
    nonzero adjacency blocks for this row tile (block-diagonal skipping).
    """

    def _level_kernel(cols_ref, cnt_ref, n2n_ref, cur_ref, msg_ref,
                      wc_ref, bc_ref, new_ref, acc_ref):
        i = pl.program_id(0)
        k = pl.program_id(1)

        @pl.when(k == 0)
        def _():
            acc_ref[...] = jnp.zeros_like(acc_ref)

        # Only accumulate for real (non-padded) block slots of this row.
        @pl.when(k < cnt_ref[i])
        def _():
            rhs = cur_ref[...]
            if use_bf16_mxu:
                # Native bf16 x bf16 MXU path with f32 accumulation; the cast
                # is on the (T x 128) cur tile, not the (T x T) adjacency.
                rhs = rhs.astype(jnp.bfloat16)
            acc_ref[...] += jnp.dot(
                n2n_ref[...], rhs, preferred_element_type=jnp.float32
            )

        @pl.when(k == pl.num_programs(1) - 1)
        def _():
            lin = (
                jnp.dot(acc_ref[...], wc_ref[...],
                        preferred_element_type=jnp.float32)
                + bc_ref[...]
            )
            new_ref[...] = jnp.maximum(lin + msg_ref[...], 0.0)

    return _level_kernel


def _output_kernel(cur_ref, subg_ref, wo_ref, bo_ref, h_ref, gp_ref):
    # reluact_fp = relu(out_params(cur)); partial pool = subg[:, tile] @ h_tile
    h = jnp.maximum(
        jnp.dot(cur_ref[...], wo_ref[...], preferred_element_type=jnp.float32)
        + bo_ref[...],
        0.0,
    )
    h_ref[...] = h
    pooled = jnp.dot(subg_ref[...], h, preferred_element_type=jnp.float32)
    gp_ref[...] = pooled[None]


# --------------------------- wrapper -----------------------------------------


def embed_mean_field(node_feat, n2n, subg, params, max_lv=MAX_LV, row_tile=None):
    """Tiled Pallas forward of EmbedMeanField. Returns (per-node, per-graph).

    Note: block-occupancy preprocessing is data-dependent (eager / NumPy);
    this wrapper is not meant to be jitted as-is.
    """
    N, F = node_feat.shape
    B = subg.shape[0]
    L = params["w_n2l_w"].shape[1]
    O = params["out_w"].shape[1]

    if row_tile is None:
        T, N_pad = _pick_tile(N)
    else:
        T = row_tile
        N_pad = _round_up(N, T)
    Lp = _round_up(L, LANE)
    Op = _round_up(O, LANE)
    n_row = N_pad // T

    f32 = jnp.float32

    # Adjacency stream dtype is gated on the data: bf16 only if it is an exact
    # representation (true for 0/1 adjacency); otherwise stay f32.
    n2n_f32 = n2n.astype(f32)
    adj_bf16_exact = bool(
        jnp.all(n2n_f32.astype(jnp.bfloat16).astype(f32) == n2n_f32)
    )
    adj_dtype = jnp.bfloat16 if adj_bf16_exact else f32
    adj_bytes = 2 if adj_bf16_exact else 4

    # Zero-pad operands. Padded node rows/cols are exact zeros in n2n/subg so
    # they never contribute to real nodes/graphs; padded latent/output columns
    # stay exactly 0 through every layer (zero weights + zero bias); results
    # are sliced back to (N, O) / (B, O) at the end.
    nf_p = jnp.zeros((N_pad, F), f32).at[:N].set(node_feat.astype(f32))
    n2n_p = jnp.zeros((N_pad, N_pad), adj_dtype).at[:N, :N].set(
        n2n_f32.astype(adj_dtype)
    )
    subg_p = jnp.zeros((B, N_pad), f32).at[:, :N].set(subg.astype(f32))

    wn = jnp.zeros((F, Lp), f32).at[:, :L].set(params["w_n2l_w"])
    bn = jnp.zeros((1, Lp), f32).at[:, :L].set(params["w_n2l_b"])
    wc = jnp.zeros((Lp, Lp), f32).at[:L, :L].set(params["conv_w"])
    bc = jnp.zeros((1, Lp), f32).at[:, :L].set(params["conv_b"])
    wo = jnp.zeros((Lp, Op), f32).at[:L, :O].set(params["out_w"])
    bo = jnp.zeros((1, Op), f32).at[:, :O].set(params["out_b"])

    # ---- block occupancy of the (block-diagonal) adjacency -------------------
    # Per row tile i, the sorted list of k tiles whose (T, T) block is nonzero.
    # TODO(synk): in production derive this directly from the sparse (COO)
    # adjacency instead of reducing the dense padded matrix.
    occ = np.asarray(
        jnp.max(jnp.abs(n2n_p).reshape(n_row, T, n_row, T), axis=(1, 3)) > 0
    )
    cnt_np = occ.sum(axis=1).astype(np.int32)
    max_k = max(int(cnt_np.max()) if cnt_np.size else 1, 1)
    cols_np = np.zeros((n_row, max_k), dtype=np.int32)
    for i in range(n_row):
        ks = np.nonzero(occ[i])[0].astype(np.int32)
        if ks.size:
            cols_np[i, : ks.size] = ks
            cols_np[i, ks.size:] = ks[-1]  # padded slots repeat last real block
    cols_flat = jnp.asarray(cols_np.reshape(-1))  # int32 (n_row * max_k,)
    cnt = jnp.asarray(cnt_np)                     # int32 (n_row,)

    # ---- stage 1: input linear + ReLU, tiled over node rows ------------------
    vmem1 = 2 * (T * F * 4 + F * Lp * 4 + Lp * 4 + 2 * T * Lp * 4)
    msg, cur = pl.pallas_call(
        _input_kernel,
        grid_spec=pltpu.PrefetchScalarGridSpec(
            num_scalar_prefetch=0,
            grid=(n_row,),
            in_specs=[
                pl.BlockSpec((T, F), lambda i: (i, 0)),
                pl.BlockSpec((F, Lp), lambda i: (0, 0)),
                pl.BlockSpec((1, Lp), lambda i: (0, 0)),
            ],
            out_specs=[
                pl.BlockSpec((T, Lp), lambda i: (i, 0)),
                pl.BlockSpec((T, Lp), lambda i: (i, 0)),
            ],
        ),
        out_shape=(
            jax.ShapeDtypeStruct((N_pad, Lp), f32),
            jax.ShapeDtypeStruct((N_pad, Lp), f32),
        ),
        compiler_params=_compiler_params(("parallel",), vmem1),
    )(nf_p, wn, bn)

    # ---- stage 2: max_lv rounds of mean-field message passing ----------------
    # Grid (row tiles : parallel, occupied k slots : arbitrary). The scalar-
    # prefetched `cols`/`cnt` drive the index_maps so only nonzero adjacency
    # blocks are streamed from HBM.
    vmem2 = (
        2 * (T * T * adj_bytes)        # adjacency tiles, double-buffered
        + 2 * 3 * (T * Lp * 4)         # cur / input_message / new tiles
        + 2 * (Lp * Lp * 4 + Lp * 4)   # conv weight + bias
        + T * Lp * 4                   # f32 n2npool accumulator
    )
    level_call = pl.pallas_call(
        _make_level_kernel(adj_bf16_exact),
        grid_spec=pltpu.PrefetchScalarGridSpec(
            num_scalar_prefetch=2,
            grid=(n_row, max_k),
            in_specs=[
                pl.BlockSpec((T, T),
                             lambda i, k, cols, cnt: (i, cols[i * max_k + k])),
                pl.BlockSpec((T, Lp),
                             lambda i, k, cols, cnt: (cols[i * max_k + k], 0)),
                pl.BlockSpec((T, Lp), lambda i, k, cols, cnt: (i, 0)),
                pl.BlockSpec((Lp, Lp), lambda i, k, cols, cnt: (0, 0)),
                pl.BlockSpec((1, Lp), lambda i, k, cols, cnt: (0, 0)),
            ],
            out_specs=pl.BlockSpec((T, Lp), lambda i, k, cols, cnt: (i, 0)),
            scratch_shapes=[pltpu.VMEM((T, Lp), f32)],
        ),
        out_shape=jax.ShapeDtypeStruct((N_pad, Lp), f32),
        compiler_params=_compiler_params(("parallel", "arbitrary"), vmem2),
    )
    for _ in range(max_lv):
        cur = level_call(cols_flat, cnt, n2n_p, cur, msg, wc, bc)

    # ---- stage 3: output linear + ReLU, per-tile partial global pools --------
    # Each row tile writes a (B, Op) partial pool; the tiny reduction over row
    # tiles + final ReLU is done in XLA, keeping the grid fully parallel.
    vmem3 = 2 * (T * Lp * 4 + B * T * 4 + Lp * Op * 4 + Op * 4
                 + T * Op * 4 + B * Op * 4)
    h_pad, gp = pl.pallas_call(
        _output_kernel,
        grid_spec=pltpu.PrefetchScalarGridSpec(
            num_scalar_prefetch=0,
            grid=(n_row,),
            in_specs=[
                pl.BlockSpec((T, Lp), lambda i: (i, 0)),   # cur rows i
                pl.BlockSpec((B, T), lambda i: (0, i)),    # subg cols i
                pl.BlockSpec((Lp, Op), lambda i: (0, 0)),  # out W
                pl.BlockSpec((1, Op), lambda i: (0, 0)),   # out b
            ],
            out_specs=[
                pl.BlockSpec((T, Op), lambda i: (i, 0)),      # per-node embed
                pl.BlockSpec((1, B, Op), lambda i: (i, 0, 0)),  # partial pools
            ],
        ),
        out_shape=(
            jax.ShapeDtypeStruct((N_pad, Op), f32),
            jax.ShapeDtypeStruct((n_row, B, Op), f32),
        ),
        compiler_params=_compiler_params(("parallel",), vmem3),
    )(cur, subg_p, wo, bo)

    g = jnp.maximum(jnp.sum(gp, axis=0), 0.0)
    return h_pad[:N, :O], g[:, :O]


# --------------------------- params / reference / test -----------------------


def init_params(key, num_node_feats, latent_dim, output_dim):
    """Synthetic parameters, stored transposed ([in, out]) vs PyTorch Linear."""
    k1, k2, k3, k4, k5, k6 = jax.random.split(key, 6)
    s = 0.1
    return {
        "w_n2l_w": s * jax.random.normal(k1, (num_node_feats, latent_dim), jnp.float32),
        "w_n2l_b": s * jax.random.normal(k2, (1, latent_dim), jnp.float32),
        "conv_w": s * jax.random.normal(k3, (latent_dim, latent_dim), jnp.float32),
        "conv_b": s * jax.random.normal(k4, (1, latent_dim), jnp.float32),
        "out_w": s * jax.random.normal(k5, (latent_dim, output_dim), jnp.float32),
        "out_b": s * jax.random.normal(k6, (1, output_dim), jnp.float32),
    }


def _reference(node_feat, n2n, subg, params, max_lv=MAX_LV, mxu_bf16=False):
    """Pure-JAX reference. mxu_bf16=True emulates the kernel's bf16 MXU inputs
    (operands rounded to bf16, f32 accumulation) for a tight structural check."""
    def rnd(x):
        return x.astype(jnp.bfloat16).astype(jnp.float32) if mxu_bf16 else x

    input_message = node_feat @ params["w_n2l_w"] + params["w_n2l_b"]
    cur = jnp.maximum(input_message, 0.0)
    adj = rnd(n2n)
    for _ in range(max_lv):
        pooled = adj @ rnd(cur)
        lin = pooled @ params["conv_w"] + params["conv_b"]
        cur = jnp.maximum(lin + input_message, 0.0)
    out = jnp.maximum(cur @ params["out_w"] + params["out_b"], 0.0)
    pooled_g = jnp.maximum(subg @ out, 0.0)
    return out, pooled_g


def _make_inputs(key, num_graphs, nodes_per_graph, num_node_feats):
    """Deterministic synthetic node features, block-diagonal 0/1 adjacency, pooling."""
    N = num_graphs * nodes_per_graph
    k_feat, k_adj = jax.random.split(key)
    node_feat = jax.random.uniform(k_feat, (N, num_node_feats), jnp.float32)
    adj_rand = jax.random.uniform(k_adj, (N, N), jnp.float32)
    adj = (adj_rand + adj_rand.T > 1.0).astype(jnp.float32)
    block_mask = jnp.kron(
        jnp.eye(num_graphs, dtype=jnp.float32),
        jnp.ones((nodes_per_graph, nodes_per_graph), jnp.float32),
    )
    eye = jnp.eye(N, dtype=jnp.float32)
    n2n = adj * block_mask * (1.0 - eye)
    subg = jnp.kron(
        jnp.eye(num_graphs, dtype=jnp.float32),
        jnp.ones((1, nodes_per_graph), jnp.float32),
    )
    return node_feat, n2n, subg


def _check_close(name, got, want, tol):
    """Max-norm relative check (robust to ReLU-boundary sign flips)."""
    err = float(jnp.max(jnp.abs(got - want)))
    scale = float(jnp.max(jnp.abs(want))) + 1.0
    assert err <= tol * scale, f"{name}: max|err|={err:.4g} scale={scale:.4g} tol={tol}"


def _run_case(name, nf, n2n, subg, params, B, O, row_tile=None):
    h, g = embed_mean_field(nf, n2n, subg, params, row_tile=row_tile)
    jax.block_until_ready((h, g))
    assert h.shape == (nf.shape[0], O) and g.shape == (B, O)
    # Tight check vs a reference that emulates the bf16 MXU inputs
    # (structural correctness of tiling / block skipping / accumulation).
    th, tg = _reference(nf, n2n, subg, params, mxu_bf16=True)
    _check_close(name + ":h(bf16-ref)", h, th, 1e-3)
    _check_close(name + ":g(bf16-ref)", g, tg, 1e-3)
    # Loose check vs the pure-f32 module semantics (bf16 MXU operand rounding
    # only; accumulation stays f32), per the relaxed-tolerance guidance.
    rh, rg = _reference(nf, n2n, subg, params)
    _check_close(name + ":h(f32-ref)", h, rh, 3e-2)
    _check_close(name + ":g(f32-ref)", g, rg, 3e-2)


if __name__ == "__main__":
    key = jax.random.PRNGKey(0)
    k_in1, k_in2, k_in3, k_param = jax.random.split(key, 4)

    num_node_feats, latent_dim, output_dim = 4, 32, 16
    params = init_params(k_param, num_node_feats, latent_dim, output_dim)

    # Case 1: tiny problem (2 graphs x 8 nodes) -> single tile, single k slot.
    nf1, n2n1, subg1 = _make_inputs(k_in1, 2, 8, num_node_feats)
    _run_case("case1", nf1, n2n1, subg1, params, B=2, O=output_dim)

    # Case 2: 2 graphs x 128 nodes, forced 128-row tiles -> tiles align with
    # the graph blocks, so the off-diagonal adjacency blocks are skipped
    # entirely (block-sparse scalar-prefetch path).
    nf2, n2n2, subg2 = _make_inputs(k_in2, 2, 128, num_node_feats)
    _run_case("case2", nf2, n2n2, subg2, params, B=2, O=output_dim, row_tile=128)

    # Case 3: 1 graph x 192 nodes, forced 128-row tiles -> 2x2 fully-occupied
    # block grid with padded node rows; exercises multi-k accumulation and the
    # partial-pool reduction in stage 3.
    nf3, n2n3, subg3 = _make_inputs(k_in3, 1, 192, num_node_feats)
    _run_case("case3", nf3, n2n3, subg3, params, B=1, O=output_dim, row_tile=128)

    print("KERNEL_OK")
</pallas_src>

<mosaic_0001>
module attributes {stable_mosaic.version = 11 : i64} {
  func.func @_input_kernel(%arg0: i32, %arg1: memref<128x4xf32, #tpu.memory_space<vmem>>, %arg2: memref<4x128xf32, #tpu.memory_space<vmem>>, %arg3: memref<1x128xf32, #tpu.memory_space<vmem>>, %arg4: memref<128x128xf32, #tpu.memory_space<vmem>>, %arg5: memref<128x128xf32, #tpu.memory_space<vmem>>) attributes {dimension_semantics = [#tpu.dimension_semantics<parallel>], iteration_bounds = array<i64: 1>, scalar_prefetch = 0 : i64, scratch_operands = 0 : i64, tpu.core_type = #tpu.core_type<tc>, window_params = [{transform_indices = @transform_0, window_bounds = array<i64: 128, 4>}, {pipeline_mode = #tpu.pipeline_mode<synchronous>, transform_indices = @transform_1, window_bounds = array<i64: 4, 128>}, {pipeline_mode = #tpu.pipeline_mode<synchronous>, transform_indices = @transform_2, window_bounds = array<i64: 1, 128>}, {transform_indices = @transform_3, window_bounds = array<i64: 128, 128>}, {transform_indices = @transform_4, window_bounds = array<i64: 128, 128>}]} {
    %c0 = arith.constant 0 : index
    %c0_0 = arith.constant 0 : index
    %0 = vector.load %arg1[%c0, %c0_0] : memref<128x4xf32, #tpu.memory_space<vmem>>, vector<128x4xf32>
    %c0_1 = arith.constant 0 : index
    %c0_2 = arith.constant 0 : index
    %1 = vector.load %arg2[%c0_1, %c0_2] : memref<4x128xf32, #tpu.memory_space<vmem>>, vector<4x128xf32>
    %cst = arith.constant dense<0.000000e+00> : vector<128x128xf32>
    %2 = tpu.matmul %0, %1, %cst {dimension_numbers = #tpu.dot_dimension_numbers<[1], [0], [0], [1], [0, 0, 1, 1], [], []>} : vector<128x4xf32>, vector<4x128xf32>, vector<128x128xf32> -> vector<128x128xf32>
    %c0_3 = arith.constant 0 : index
    %c0_4 = arith.constant 0 : index
    %3 = vector.load %arg3[%c0_3, %c0_4] : memref<1x128xf32, #tpu.memory_space<vmem>>, vector<1x128xf32>
    %4 = vector.broadcast %3 : vector<1x128xf32> to vector<128x128xf32>
    %5 = arith.addf %2, %4 : vector<128x128xf32>
    %c0_5 = arith.constant 0 : index
    %c0_6 = arith.constant 0 : index
    %6 = vector.load %arg4[%c0_5, %c0_6] : memref<128x128xf32, #tpu.memory_space<vmem>>, vector<128x128xf32>
    tpu.vector_store %arg4[%c0_5, %c0_6], %5 {strides = array<i32>} : memref<128x128xf32, #tpu.memory_space<vmem>>, vector<128x128xf32>,
    %cst_7 = arith.constant 0.000000e+00 : f32
    %7 = vector.broadcast %cst_7 : f32 to vector<128x128xf32>
    %8 = arith.maximumf %5, %7 : vector<128x128xf32>
    %c0_8 = arith.constant 0 : index
    %c0_9 = arith.constant 0 : index
    %9 = vector.load %arg5[%c0_8, %c0_9] : memref<128x128xf32, #tpu.memory_space<vmem>>, vector<128x128xf32>
    tpu.vector_store %arg5[%c0_8, %c0_9], %8 {strides = array<i32>} : memref<128x128xf32, #tpu.memory_space<vmem>>, vector<128x128xf32>,
    return
  }
  func.func @transform_0(%arg0: i32) -> (i32, i32) {
    %c0_i32 = arith.constant 0 : i32
    %c0_i32_0 = arith.constant 0 : i32
    return %arg0, %c0_i32 : i32, i32
  }
  func.func @transform_1(%arg0: i32) -> (i32, i32) {
    %c0_i32 = arith.constant 0 : i32
    %c0_i32_0 = arith.constant 0 : i32
    %c0_i32_1 = arith.constant 0 : i32
    return %c0_i32, %c0_i32_0 : i32, i32
  }
  func.func @transform_2(%arg0: i32) -> (i32, i32) {
    %c0_i32 = arith.constant 0 : i32
    %c0_i32_0 = arith.constant 0 : i32
    %c0_i32_1 = arith.constant 0 : i32
    return %c0_i32, %c0_i32_0 : i32, i32
  }
  func.func @transform_3(%arg0: i32) -> (i32, i32) {
    %c0_i32 = arith.constant 0 : i32
    %c0_i32_0 = arith.constant 0 : i32
    return %arg0, %c0_i32 : i32, i32
  }
  func.func @transform_4(%arg0: i32) -> (i32, i32) {
    %c0_i32 = arith.constant 0 : i32
    %c0_i32_0 = arith.constant 0 : i32
    return %arg0, %c0_i32 : i32, i32
  }
}

</mosaic_0001>

<bundles_post_ra>
// kernel: tpu_custom_call.1
= control target key start
LH: loop header
LB: loop body
LE: loop exit
PB: predicated region body
PF: predicated region fallthrough
CT: control target
= control target key end

     0   :  { %10 = vsyncpa [#allocation3], 0  ;;  %vm91_vm0 = vcmask 1043456   ;;  %vm42_vm1 = vcmask 31744   ;;  %s561_s0 = inlined_call_operand.vmem [shape: f32[128,4], index: 0, kind: input, shape index: {}]   ;;  %s562_s1 = inlined_call_operand.vmem [shape: f32[4,128], index: 1, kind: input, shape index: {}]   ;;  %s563_s2 = inlined_call_operand.vmem [shape: f32[1,128], index: 2, kind: input, shape index: {}]   ;;  %s564_s3 = inlined_call_operand.hbm [shape: f32[128,128], index: 3, kind: output, shape index: {0}]   ;;  %s565_s4 = inlined_call_operand.hbm [shape: f32[128,128], index: 4, kind: output, shape index: {1}]  }
   0x1   :  { %v34_v0 = vld [vmem:[%s562_s1] sm:$0xf]  ;;  %v19_v3 = vld [vmem:[%s561_s0 + $0x8] sm:$0xff]  ;;  %v20_v5 = vld [vmem:[%s561_s0 + $0x10] sm:$0xff] }
   0x2   :  { %v18_v1 = vld [vmem:[%s561_s0] sm:$0xff]  ;;  %355 = vmatprep.subr.msk.mxu0 %vm91_vm0, %v34_v0  ;;  %381 = vmatprep.subr.msk.mxu1 %vm91_vm0, %v34_v0  ;;  %v27_v4 = vld [vmem:[%s561_s0 + $0x48] sm:$0xff]  ;;  %v28_v6 = vld [vmem:[%s561_s0 + $0x50] sm:$0xff] }
   0x3   :  { %v26_v2 = vld [vmem:[%s561_s0 + $0x40] sm:$0xff]  ;;  %356 = vmatpush3.msk.msra.mxu0 %vm91_vm0, %v34_v0  ;;  %382 = vmatpush3.msk.msra.mxu1 %vm91_vm0, %v34_v0  ;;  %v21_v7 = vld [vmem:[%s561_s0 + $0x18] sm:$0xff] }
   0x4   :  { %357 = vmatprep.mubr.msk.f32.mxu0 %vm42_vm1, %v18_v1  ;;  %369 = vmatprep.mubr.msk.f32.mxu1 %vm42_vm1, %v26_v2  ;;  %v29_v8 = vld [vmem:[%s561_s0 + $0x58] sm:$0xff] }
   0x5   :  { %358 = vmatmul.mubr.msk.f32.vlgmr.msra.gmra.mxu0 %vm42_vm1, %v19_v3  ;;  %370 = vmatmul.mubr.msk.f32.vlgmr.msra.gmra.mxu1 %vm42_vm1, %v27_v4 }
   0x6   :  { %360 = vmatprep.mubr.msk.f32.mxu0 %vm42_vm1, %v20_v5  ;;  %372 = vmatprep.mubr.msk.f32.mxu1 %vm42_vm1, %v28_v6 }
   0x7   :  { %11 = vsyncpa [#allocation5], 0  ;;  %v22_v9 = vld [vmem:[%s561_s0 + $0x20] sm:$0xff]  ;;  %v23_v11 = vld [vmem:[%s561_s0 + $0x28] sm:$0xff]  ;;  %s432_s24 = smov [#allocation4]  }
   0x8   :  { %v30_v10 = vld [vmem:[%s561_s0 + $0x60] sm:$0xff]  ;;  %v31_v12 = vld [vmem:[%s561_s0 + $0x68] sm:$0xff]  ;;  %v24_v13 = vld [vmem:[%s561_s0 + $0x30] sm:$0xff]  ;;  %s305_s1 = sshll.u32 %s432_s24, 4  ;;  %s306_s1 = int_to_ptr.vmem [resolvable:$true] %s305_s1 }
   0x9   :  { %361 = vmatmul.mubr.msk.f32.gmra.mxu0 %vm42_vm1, %v21_v7  ;;  %373 = vmatmul.mubr.msk.f32.gmra.mxu1 %vm42_vm1, %v29_v8  ;;  %v32_v14 = vld [vmem:[%s561_s0 + $0x70] sm:$0xff]  ;;  %v25_v15 = vld [vmem:[%s561_s0 + $0x38] sm:$0xff]  ;;  %v530_v17 = vld [vmem:[%s563_s2] ss:$0 sm:$0xff] }
   0xa   :  { %363 = vmatprep.mubr.msk.f32.mxu0 %vm42_vm1, %v22_v9  ;;  %375 = vmatprep.mubr.msk.f32.mxu1 %vm42_vm1, %v30_v10  ;;  %v33_v16 = vld [vmem:[%s561_s0 + $0x78] sm:$0xff]  ;;  %s431_s0 = smov [#allocation2]  }
   0xb   :  { %s293_s2 = sshll.u32 %s431_s0, 4  ;;  %s546_s2 = int_to_ptr.vmem [resolvable:$true] %s293_s2 }
   0xc   :  { %s387_s25 = scalar_lea.vmem %s546_s2, 2048  ;;  %p392_p1 = scmp.lt.s32.totalorder %s546_s2, %s546_s2 }
   0xd   :  { %364 = vmatmul.mubr.msk.f32.gmra.mxu0 %vm42_vm1, %v23_v11  ;;  %376 = vmatmul.mubr.msk.f32.gmra.mxu1 %vm42_vm1, %v31_v12  ;;  %p388_p0 = scmp.ne.s32.totalorder %s546_s2, %s387_s25  ;;  %p393_p2 = scmp.lt.s32.totalorder %s387_s25, %s387_s25 }
   0xe   :  { %366 = vmatprep.mubr.msk.f32.mxu0 %vm42_vm1, %v24_v13  ;;  %378 = vmatprep.mubr.msk.f32.mxu1 %vm42_vm1, %v32_v14 }
   0xf   :  { %p394_p3 = por %p393_p2, %p392_p1 }
  0x11   :  { %367 = vmatmul.mubr.msk.f32.gmra.mxu0 %vm42_vm1, %v25_v15  ;;  %379 = vmatmul.mubr.msk.f32.gmra.mxu1 %vm42_vm1, %v33_v16  ;;  %p395_p4 = pnand %p394_p3, %p388_p0 }
  0xc5   :  { %v359_v18 = vpop.f32.mrf.mxu0  ;;  %v371_v19 = vpop.f32.mrf.mxu1 }
  0xc6   :  { %v167_v20 = vadd.f32 %v359_v18, %v530_v17  ;;  %v207_v21 = vadd.f32 %v371_v19, %v530_v17 }
  0xc7   :  { %v161_v22 = vpop.f32.mrf.mxu0  ;;  %v201_v23 = vpop.f32.mrf.mxu1 }
  0xc8   :  { %241 = vst [vmem:[#allocation2 + $0x8] sm:$0xff] %v167_v20  ;;  %v257_v24 = vmax.f32 %v167_v20, 0.0  ;;  %249 = vst [vmem:[#allocation2 + $0x48] sm:$0xff] %v207_v21  ;;  %v265_v25 = vmax.f32 %v207_v21, 0.0  ;;  %v162_v26 = vadd.f32 %v530_v17, %v161_v22  ;;  %v202_v27 = vadd.f32 %v530_v17, %v201_v23 }
  0xc9   :  { %v362_v28 = vpop.f32.mrf.mxu0  ;;  %v374_v29 = vpop.f32.mrf.mxu1 }
  0xca   :  { %273 = vst [vmem:[#allocation4 + $0x8] sm:$0xff] %v257_v24  ;;  %281 = vst [vmem:[#allocation4 + $0x48] sm:$0xff] %v265_v25  ;;  %v256_v30 = vmax.f32 %v162_v26, 0.0  ;;  %v264_v31 = vmax.f32 %v202_v27, 0.0  ;;  %v177_v32 = vadd.f32 %v362_v28, %v530_v17  ;;  %v217_v33 = vadd.f32 %v374_v29, %v530_v17 }
  0xcb   :  { %240 = vst [vmem:[#allocation2] sm:$0xff] %v162_v26  ;;  %248 = vst [vmem:[#allocation2 + $0x40] sm:$0xff] %v202_v27  ;;  %v171_v34 = vpop.f32.mrf.mxu0  ;;  %v211_v35 = vpop.f32.mrf.mxu1 }
  0xcc   :  { %272 = vst [vmem:[#allocation4] sm:$0xff] %v256_v30  ;;  %280 = vst [vmem:[#allocation4 + $0x40] sm:$0xff] %v264_v31  ;;  %v259_v36 = vmax.f32 %v177_v32, 0.0  ;;  %v267_v37 = vmax.f32 %v217_v33, 0.0  ;;  %v172_v38 = vadd.f32 %v530_v17, %v171_v34  ;;  %v212_v39 = vadd.f32 %v530_v17, %v211_v35 }
  0xcd   :  { %243 = vst [vmem:[#allocation2 + $0x18] sm:$0xff] %v177_v32  ;;  %251 = vst [vmem:[#allocation2 + $0x58] sm:$0xff] %v217_v33  ;;  %v365_v40 = vpop.f32.mrf.mxu0  ;;  %v377_v41 = vpop.f32.mrf.mxu1 }
  0xce   :  { %275 = vst [vmem:[#allocation4 + $0x18] sm:$0xff] %v259_v36  ;;  %283 = vst [vmem:[#allocation4 + $0x58] sm:$0xff] %v267_v37  ;;  %v258_v42 = vmax.f32 %v172_v38, 0.0  ;;  %v266_v43 = vmax.f32 %v212_v39, 0.0  ;;  %v187_v44 = vadd.f32 %v365_v40, %v530_v17  ;;  %v227_v45 = vadd.f32 %v377_v41, %v530_v17 }
  0xcf   :  { %242 = vst [vmem:[#allocation2 + $0x10] sm:$0xff] %v172_v38  ;;  %250 = vst [vmem:[#allocation2 + $0x50] sm:$0xff] %v212_v39  ;;  %v181_v46 = vpop.f32.mrf.mxu0  ;;  %v221_v47 = vpop.f32.mrf.mxu1 }
  0xd0   :  { %274 = vst [vmem:[#allocation4 + $0x10] sm:$0xff] %v258_v42  ;;  %282 = vst [vmem:[#allocation4 + $0x50] sm:$0xff] %v266_v43  ;;  %v261_v48 = vmax.f32 %v187_v44, 0.0  ;;  %v269_v49 = vmax.f32 %v227_v45, 0.0  ;;  %v182_v50 = vadd.f32 %v530_v17, %v181_v46  ;;  %v222_v51 = vadd.f32 %v530_v17, %v221_v47 }
  0xd1   :  { %245 = vst [vmem:[#allocation2 + $0x28] sm:$0xff] %v187_v44  ;;  %253 = vst [vmem:[#allocation2 + $0x68] sm:$0xff] %v227_v45  ;;  %v368_v52 = vpop.f32.mrf.mxu0  ;;  %v380_v53 = vpop.f32.mrf.mxu1 }
  0xd2   :  { %277 = vst [vmem:[#allocation4 + $0x28] sm:$0xff] %v261_v48  ;;  %285 = vst [vmem:[#allocation4 + $0x68] sm:$0xff] %v269_v49  ;;  %v260_v54 = vmax.f32 %v182_v50, 0.0  ;;  %v268_v55 = vmax.f32 %v222_v51, 0.0  ;;  %v197_v56 = vadd.f32 %v368_v52, %v530_v17  ;;  %v237_v57 = vadd.f32 %v380_v53, %v530_v17 }
  0xd3   :  { %244 = vst [vmem:[#allocation2 + $0x20] sm:$0xff] %v182_v50  ;;  %252 = vst [vmem:[#allocation2 + $0x60] sm:$0xff] %v222_v51  ;;  %v191_v58 = vpop.f32.mrf.mxu0  ;;  %v231_v59 = vpop.f32.mrf.mxu1 }
  0xd4   :  { %276 = vst [vmem:[#allocation4 + $0x20] sm:$0xff] %v260_v54  ;;  %284 = vst [vmem:[#allocation4 + $0x60] sm:$0xff] %v268_v55  ;;  %v263_v60 = vmax.f32 %v197_v56, 0.0  ;;  %v271_v61 = vmax.f32 %v237_v57, 0.0  ;;  %v192_v62 = vadd.f32 %v530_v17, %v191_v58  ;;  %v232_v63 = vadd.f32 %v530_v17, %v231_v59 }
  0xd5   :  { %247 = vst [vmem:[#allocation2 + $0x38] sm:$0xff] %v197_v56  ;;  %255 = vst [vmem:[#allocation2 + $0x78] sm:$0xff] %v237_v57 }
  0xd6   :  { %279 = vst [vmem:[#allocation4 + $0x38] sm:$0xff] %v263_v60  ;;  %287 = vst [vmem:[#allocation4 + $0x78] sm:$0xff] %v271_v61  ;;  %v262_v0 = vmax.f32 %v192_v62, 0.0  ;;  %v270_v1 = vmax.f32 %v232_v63, 0.0 }
  0xd7   :  { %246 = vst [vmem:[#allocation2 + $0x30] sm:$0xff] %v192_v62  ;;  %254 = vst [vmem:[#allocation2 + $0x70] sm:$0xff] %v232_v63 }
  0xd8   :  { %398 = shalt.err (!%p395_p4)
}
  0xd9   :  { %s433_s26 = smov 128   ;;  %s434_s27 = smov 8   ;;  %278 = vst [vmem:[#allocation4 + $0x30] sm:$0xff] %v262_v0  ;;  %286 = vst [vmem:[#allocation4 + $0x70] sm:$0xff] %v270_v1 }
  0xda   :  { %299 = dma.vmem_to_hbm [thread:$0]  %s546_s2, 2048, %s564_s3, [#allocation3], %s433_s26, %s433_s26, %s434_s27  }
  0xdb   :  { %s407_s30 = scalar_lea.vmem %s306_s1, 2048  ;;  %p412_p6 = scmp.lt.s32.totalorder %s306_s1, %s306_s1 }
  0xdc   :  { %p408_p5 = scmp.ne.s32.totalorder %s306_s1, %s407_s30  ;;  %p413_p7 = scmp.lt.s32.totalorder %s407_s30, %s407_s30 }
  0xde   :  { %p414_p8 = por %p413_p7, %p412_p6 }
  0xe0   :  { %p415_p9 = pnand %p414_p8, %p408_p5 }
  0xe2   :  { %418 = shalt.err (!%p415_p9)
}
  0xe3   :  { %311 = dma.vmem_to_hbm [thread:$0]  %s306_s1, 2048, %s565_s4, [#allocation5], %s433_s26, %s433_s26, %s434_s27  }
  0xe4   :  { %427 = dma.done.wait [#allocation3], 2048  }
  0xe5   :  { %428 = vsyncadd [#allocation3], 4294965248 }
  0xe6   :  { %429 = dma.done.wait [#allocation5], 2048  }
  0xe7   :  { %430 = vsyncadd [#allocation5], 4294965248 }
  0xe8   :  { %318 = vsyncpa [#allocation3], 1 }
  0xe9   :  { %319 = vsyncpa [#allocation5], 1 }

</bundles_post_ra>
